<compile_context>
chip_gen: v5e
topology: v5e:2x2
jax: 0.10.0
libtpu: 0.0.40
codegen_flags: <defaults>
</compile_context>

<pallas_src>
import functools
import math

import jax
import jax.numpy as jnp
from jax.experimental import pallas as pl
from jax.experimental.pallas import tpu as pltpu

_EPS = 1e-5


def _round_up(x, m):
    return (x + m - 1) // m * m


def _tensorcores_per_chip():
    """Best-effort TensorCore count per chip (2 on v7x). Defensive: defaults to 1."""
    try:
        info = pltpu.get_tpu_info()
    except Exception:
        return 1
    for attr in ("num_tensorcores", "tensorcore_count", "tensorcores_per_chip",
                 "num_cores_per_chip", "num_cores", "core_count"):
        v = getattr(info, attr, None)
        try:
            v = int(v)
        except (TypeError, ValueError):
            continue
        if v > 0:
            return v
    return 1


def _biasfree_ln_kernel(x_ref, w_ref, s_ref, st_ref, o_ref, *, c):
    """One (TR, L) block, L = p*c; each packed row holds p independent logical rows.

    Per-row sums and the lane broadcast of the inverse scale run as tiny segment
    matmuls on the otherwise-idle MXU (precision=HIGHEST keeps f32 accuracy);
    the VPU does ~3 elementwise ops/element; rsqrt goes to the EUP. No XLU
    cross-lane reductions anywhere, so the kernel stays HBM-bound.
    """
    x = x_ref[...].astype(jnp.float32)        # (TR, L)
    w = w_ref[...]                            # (1, L)  f32
    s = s_ref[...]                            # (L, p)  0/1 segment membership
    st = st_ref[...]                          # (p, L)  transpose (host-built)

    hi = jax.lax.Precision.HIGHEST
    inv_c = jnp.float32(1.0 / c)
    sum_x = jnp.dot(x, s, precision=hi, preferred_element_type=jnp.float32)       # (TR, p)
    sum_x2 = jnp.dot(x * x, s, precision=hi, preferred_element_type=jnp.float32)  # (TR, p)
    mean_x = sum_x * inv_c
    mean_x2 = sum_x2 * inv_c
    var = jnp.maximum(mean_x2 - mean_x * mean_x, 0.0)
    # TODO(synk): if |mean| >> std accuracy ever matters, add a (x - mean)^2 pass.
    inv = jax.lax.rsqrt(var + jnp.float32(_EPS))                                  # (TR, p)
    inv_full = jnp.dot(inv, st, precision=hi, preferred_element_type=jnp.float32)  # (TR, L)
    o_ref[...] = (x * inv_full * w).astype(o_ref.dtype)


def biasfree_layernorm(x, weight, *, row_tile=None, tile_bytes=2 << 20,
                       vmem_limit_bytes=48 * 1024 * 1024):
    """BiasFree LayerNorm over the last axis. x: (..., C); weight: (C,)."""
    orig_shape = x.shape
    C = int(orig_shape[-1])
    rows = int(math.prod(orig_shape[:-1]))

    # Lane packing: p logical rows per 128-lane-aligned packed row of width L.
    if C % 128 == 0:
        p, L = 1, C
    else:
        lcm = math.lcm(C, 128)
        if lcm <= 512:
            p, L = lcm // C, lcm
        else:
            p, L = 1, C          # fallback: masked partial stores unavoidable

    x2d = x.reshape(rows, C)
    pad_rows = (-rows) % p       # <= p-1 rows; zero on the common path
    if pad_rows:
        x2d = jnp.pad(x2d, ((0, pad_rows), (0, 0)))
    rows_p = rows + pad_rows
    packed_rows = rows_p // p
    xp = x2d.reshape(packed_rows, L)          # free row-major view

    itemsize = jnp.dtype(x.dtype).itemsize
    user_tile = row_tile is not None
    if row_tile is None:
        row_tile = max(16, tile_bytes // (L * itemsize))
        row_tile = min(int(row_tile), 8192)
    row_tile = int(row_tile)
    if row_tile >= packed_rows:
        row_tile = packed_rows                # single block == full array dim
    else:
        row_tile = max(16, _round_up(row_tile, 16))   # f32/bf16 sublane friendly
        if not user_tile:
            tc = _tensorcores_per_chip()
            if tc >= 2:
                # Give every TensorCore >= 4 pipelined steps (floor 512 rows) so
                # the BlockSpec pipeline can prefetch i+1 while computing i.
                target_steps = 4 * tc
                if (pl.cdiv(packed_rows, row_tile) < target_steps
                        and packed_rows >= target_steps * 512):
                    row_tile = max(512, _round_up(pl.cdiv(packed_rows, target_steps), 16))

    grid = (pl.cdiv(packed_rows, row_tile),)

    # Host-built, VMEM-resident constants (constant index_map => loaded once).
    w_l = jnp.tile(weight.astype(jnp.float32).reshape(1, C), (1, p))      # (1, L)
    lane = jnp.arange(L, dtype=jnp.int32)
    seg = jnp.arange(p, dtype=jnp.int32)
    S = (lane[:, None] // C == seg[None, :]).astype(jnp.float32)          # (L, p)
    ST = S.T                                                              # (p, L)

    kernel = functools.partial(_biasfree_ln_kernel, c=C)
    out_p = pl.pallas_call(
        kernel,
        out_shape=jax.ShapeDtypeStruct((packed_rows, L), x.dtype),
        grid_spec=pltpu.PrefetchScalarGridSpec(
            num_scalar_prefetch=0,
            grid=grid,
            in_specs=[
                pl.BlockSpec((row_tile, L), lambda i: (i, 0)),
                pl.BlockSpec((1, L), lambda i: (0, 0)),
                pl.BlockSpec((L, p), lambda i: (0, 0)),
                pl.BlockSpec((p, L), lambda i: (0, 0)),
            ],
            out_specs=pl.BlockSpec((row_tile, L), lambda i: (i, 0)),
        ),
        compiler_params=pltpu.CompilerParams(
            dimension_semantics=("parallel",),
            vmem_limit_bytes=vmem_limit_bytes,
        ),
    )(xp, w_l, S, ST)

    out2d = out_p.reshape(rows_p, C)
    if pad_rows:
        out2d = out2d[:rows]
    return out2d.reshape(orig_shape)


def _reference(x, weight):
    x32 = x.astype(jnp.float32)
    var = jnp.var(x32, axis=-1, keepdims=True)        # biased == unbiased=False
    return (x32 / jnp.sqrt(var + _EPS) * weight.astype(jnp.float32)).astype(x.dtype)


if __name__ == "__main__":
    key = jax.random.PRNGKey(0)
    k1, k2, k3, k4, k5 = jax.random.split(key, 5)

    # 1) AFENet-style tokens (B, H*W, C), C=32 -> lane-packed path (p=4, L=128).
    B, H, W, C = 2, 8, 8, 32
    x = jax.random.normal(k1, (B, H * W, C), dtype=jnp.float32)
    w_ones = jnp.ones((C,), dtype=jnp.float32)        # module init: torch.ones(C)
    w_rand = 0.5 + jax.random.uniform(k2, (C,), dtype=jnp.float32)

    out = jax.block_until_ready(biasfree_layernorm(x, w_ones))
    assert out.shape == x.shape
    assert jnp.allclose(out, _reference(x, w_ones), atol=2e-5, rtol=2e-5), "mismatch (ones weight)"
    out = jax.block_until_ready(biasfree_layernorm(x, w_rand))
    assert jnp.allclose(out, _reference(x, w_rand), atol=2e-5, rtol=2e-5), "mismatch (random weight)"

    # 2) C=48 -> lcm packing (p=8, L=384); rows % p != 0 exercises the <=p-1 pad path.
    x2 = jax.random.normal(k3, (1, 61, 48), dtype=jnp.float32)
    w2 = 0.5 + jax.random.uniform(k4, (48,), dtype=jnp.float32)
    out2 = jax.block_until_ready(biasfree_layernorm(x2, w2))
    assert out2.shape == x2.shape
    assert jnp.allclose(out2, _reference(x2, w2), atol=2e-5, rtol=2e-5), "mismatch (C=48 path)"

    # 3) C=128 -> p=1 MXU-stats path, with an explicit small row_tile so the grid
    #    has a masked partial edge block (cdiv grid, OOB writes dropped).
    x3 = jax.random.normal(k5, (2, 44, 128), dtype=jnp.float32)
    w3 = jnp.ones((128,), dtype=jnp.float32)
    out3 = jax.block_until_ready(biasfree_layernorm(x3, w3, row_tile=32))
    assert out3.shape == x3.shape
    assert jnp.allclose(out3, _reference(x3, w3), atol=2e-5, rtol=2e-5), "mismatch (C=128 path)"

    print("KERNEL_OK")
</pallas_src>

<mosaic_0001>
module attributes {stable_mosaic.version = 11 : i64} {
  func.func @_biasfree_ln_kernel(%arg0: i32, %arg1: memref<32x128xf32, #tpu.memory_space<vmem>>, %arg2: memref<1x128xf32, #tpu.memory_space<vmem>>, %arg3: memref<128x4xf32, #tpu.memory_space<vmem>>, %arg4: memref<4x128xf32, #tpu.memory_space<vmem>>, %arg5: memref<32x128xf32, #tpu.memory_space<vmem>>) attributes {dimension_semantics = [#tpu.dimension_semantics<parallel>], iteration_bounds = array<i64: 1>, scalar_prefetch = 0 : i64, scratch_operands = 0 : i64, tpu.core_type = #tpu.core_type<tc>, window_params = [{transform_indices = @transform_0, window_bounds = array<i64: 32, 128>}, {pipeline_mode = #tpu.pipeline_mode<synchronous>, transform_indices = @transform_1, window_bounds = array<i64: 1, 128>}, {pipeline_mode = #tpu.pipeline_mode<synchronous>, transform_indices = @transform_2, window_bounds = array<i64: 128, 4>}, {pipeline_mode = #tpu.pipeline_mode<synchronous>, transform_indices = @transform_3, window_bounds = array<i64: 4, 128>}, {transform_indices = @transform_4, window_bounds = array<i64: 32, 128>}]} {
    %c0 = arith.constant 0 : index
    %c0_0 = arith.constant 0 : index
    %0 = vector.load %arg1[%c0, %c0_0] : memref<32x128xf32, #tpu.memory_space<vmem>>, vector<32x128xf32>
    %c0_1 = arith.constant 0 : index
    %c0_2 = arith.constant 0 : index
    %1 = vector.load %arg2[%c0_1, %c0_2] : memref<1x128xf32, #tpu.memory_space<vmem>>, vector<1x128xf32>
    %c0_3 = arith.constant 0 : index
    %c0_4 = arith.constant 0 : index
    %2 = vector.load %arg3[%c0_3, %c0_4] : memref<128x4xf32, #tpu.memory_space<vmem>>, vector<128x4xf32>
    %c0_5 = arith.constant 0 : index
    %c0_6 = arith.constant 0 : index
    %3 = vector.load %arg4[%c0_5, %c0_6] : memref<4x128xf32, #tpu.memory_space<vmem>>, vector<4x128xf32>
    %cst = arith.constant dense<0.000000e+00> : vector<32x4xf32>
    %4 = tpu.matmul %0, %2, %cst {dimension_numbers = #tpu.dot_dimension_numbers<[1], [0], [0], [1], [0, 0, 1, 1], [], []>, precision = #tpu.contract_precision<fp32>} : vector<32x128xf32>, vector<128x4xf32>, vector<32x4xf32> -> vector<32x4xf32>
    %5 = arith.mulf %0, %0 : vector<32x128xf32>
    %cst_7 = arith.constant dense<0.000000e+00> : vector<32x4xf32>
    %6 = tpu.matmul %5, %2, %cst_7 {dimension_numbers = #tpu.dot_dimension_numbers<[1], [0], [0], [1], [0, 0, 1, 1], [], []>, precision = #tpu.contract_precision<fp32>} : vector<32x128xf32>, vector<128x4xf32>, vector<32x4xf32> -> vector<32x4xf32>
    %cst_8 = arith.constant 3.125000e-02 : f32
    %7 = vector.broadcast %cst_8 : f32 to vector<32x4xf32>
    %8 = arith.mulf %4, %7 : vector<32x4xf32>
    %cst_9 = arith.constant 3.125000e-02 : f32
    %9 = vector.broadcast %cst_9 : f32 to vector<32x4xf32>
    %10 = arith.mulf %6, %9 : vector<32x4xf32>
    %11 = arith.mulf %8, %8 : vector<32x4xf32>
    %12 = arith.subf %10, %11 : vector<32x4xf32>
    %cst_10 = arith.constant 0.000000e+00 : f32
    %13 = vector.broadcast %cst_10 : f32 to vector<32x4xf32>
    %14 = arith.maximumf %12, %13 : vector<32x4xf32>
    %cst_11 = arith.constant 9.99999974E-6 : f32
    %15 = vector.broadcast %cst_11 : f32 to vector<32x4xf32>
    %16 = arith.addf %14, %15 : vector<32x4xf32>
    %17 = math.rsqrt %16 : vector<32x4xf32>
    %cst_12 = arith.constant dense<0.000000e+00> : vector<32x128xf32>
    %18 = tpu.matmul %17, %3, %cst_12 {dimension_numbers = #tpu.dot_dimension_numbers<[1], [0], [0], [1], [0, 0, 1, 1], [], []>, precision = #tpu.contract_precision<fp32>} : vector<32x4xf32>, vector<4x128xf32>, vector<32x128xf32> -> vector<32x128xf32>
    %19 = arith.mulf %0, %18 : vector<32x128xf32>
    %20 = vector.broadcast %1 : vector<1x128xf32> to vector<32x128xf32>
    %21 = arith.mulf %19, %20 : vector<32x128xf32>
    %c0_13 = arith.constant 0 : index
    %c0_14 = arith.constant 0 : index
    %22 = vector.load %arg5[%c0_13, %c0_14] : memref<32x128xf32, #tpu.memory_space<vmem>>, vector<32x128xf32>
    tpu.vector_store %arg5[%c0_13, %c0_14], %21 {strides = array<i32>} : memref<32x128xf32, #tpu.memory_space<vmem>>, vector<32x128xf32>,
    return
  }
  func.func @transform_0(%arg0: i32) -> (i32, i32) {
    %c0_i32 = arith.constant 0 : i32
    %c0_i32_0 = arith.constant 0 : i32
    return %arg0, %c0_i32 : i32, i32
  }
  func.func @transform_1(%arg0: i32) -> (i32, i32) {
    %c0_i32 = arith.constant 0 : i32
    %c0_i32_0 = arith.constant 0 : i32
    %c0_i32_1 = arith.constant 0 : i32
    return %c0_i32, %c0_i32_0 : i32, i32
  }
  func.func @transform_2(%arg0: i32) -> (i32, i32) {
    %c0_i32 = arith.constant 0 : i32
    %c0_i32_0 = arith.constant 0 : i32
    %c0_i32_1 = arith.constant 0 : i32
    return %c0_i32, %c0_i32_0 : i32, i32
  }
  func.func @transform_3(%arg0: i32) -> (i32, i32) {
    %c0_i32 = arith.constant 0 : i32
    %c0_i32_0 = arith.constant 0 : i32
    %c0_i32_1 = arith.constant 0 : i32
    return %c0_i32, %c0_i32_0 : i32, i32
  }
  func.func @transform_4(%arg0: i32) -> (i32, i32) {
    %c0_i32 = arith.constant 0 : i32
    %c0_i32_0 = arith.constant 0 : i32
    return %arg0, %c0_i32 : i32, i32
  }
}

</mosaic_0001>

<bundles_post_ra>
// kernel: tpu_custom_call.1
= control target key start
LH: loop header
LB: loop body
LE: loop exit
PB: predicated region body
PF: predicated region fallthrough
CT: control target
= control target key end

     0   :  { %s1944_s0 = inlined_call_operand.vmem [shape: f32[32,128], index: 0, kind: input, shape index: {}]   ;;  %s1945_s1 = inlined_call_operand.vmem [shape: f32[1,128], index: 1, kind: input, shape index: {}]   ;;  %s1946_s2 = inlined_call_operand.vmem [shape: f32[128,4], index: 2, kind: input, shape index: {}]   ;;  %s1947_s3 = inlined_call_operand.vmem [shape: f32[4,128], index: 3, kind: input, shape index: {}]   ;;  %s1948_s4 = inlined_call_operand.hbm [shape: f32[32,128], index: 4, kind: output, shape index: {}]  }
   0x1   :  { %v38_v0 = vld [vmem:[%s1946_s2 + $0x78] sm:$0xff]  ;;  %v37_v1 = vld [vmem:[%s1946_s2 + $0x70] sm:$0xff]  ;;  %v36_v2 = vld [vmem:[%s1946_s2 + $0x68] sm:$0xff] }
   0x2   :  { %v1344_v3 = vand.u32 4294901760, %v38_v0  ;;  %v1346_v4 = vand.u32 4294901760, %v37_v1  ;;  %v1348_v5 = vand.u32 4294901760, %v36_v2  ;;  %v35_v6 = vld [vmem:[%s1946_s2 + $0x60] sm:$0xff]  ;;  %v34_v7 = vld [vmem:[%s1946_s2 + $0x58] sm:$0xff]  ;;  %v33_v8 = vld [vmem:[%s1946_s2 + $0x50] sm:$0xff] }
   0x3   :  { %v1359_v9 = vand.u32 4294901760, %v35_v6  ;;  %v1361_v10 = vand.u32 4294901760, %v34_v7  ;;  %v1363_v11 = vand.u32 4294901760, %v33_v8  ;;  %v32_v12 = vld [vmem:[%s1946_s2 + $0x48] sm:$0xff]  ;;  %v31_v13 = vld [vmem:[%s1946_s2 + $0x40] sm:$0xff]  ;;  %v30_v18 = vld [vmem:[%s1946_s2 + $0x38] sm:$0xff] }
   0x4   :  { %41 = vmatpush.msra.mxu0 %v1344_v3  ;;  %v1373_v14 = vsub.f32 %v38_v0, %v1344_v3  ;;  %288 = vmatpush.msra.mxu3 %v1344_v3  ;;  %v1377_v15 = vsub.f32 %v37_v1, %v1346_v4  ;;  %v1380_v16 = vsub.f32 %v36_v2, %v1348_v5  ;;  %v1382_v17 = vand.u32 4294901760, %v32_v12  ;;  %v29_v29 = vld [vmem:[%s1946_s2 + $0x30] sm:$0xff] }
   0x5   :  { %v1388_v19 = vsub.f32 %v35_v6, %v1359_v9  ;;  %v1391_v20 = vsub.f32 %v34_v7, %v1361_v10  ;;  %v1393_v21 = vand.u32 4294901760, %v31_v13  ;;  %v1396_v22 = vsub.f32 %v33_v8, %v1363_v11 }
   0x6   :  { %1963 = vst [vmem:[#allocation5_spill] sm:$0xff] %v1373_v14  ;;  %43 = vmatpush.msra.mxu0 %v1346_v4  ;;  %220 = vmatpush.msra.mxu2 %v1373_v14  ;;  %v1401_v23 = vand.u32 4294901760, %v1373_v14  ;;  %v1404_v24 = vand.u32 4294901760, %v1377_v15  ;;  %v1407_v25 = vand.u32 4294901760, %v1380_v16  ;;  %v1413_v27 = vand.u32 4294901760, %v30_v18 }
   0x7   :  { %1964 = vst [vmem:[#allocation6_spill] sm:$0xff] %v1377_v15  ;;  %290 = vmatpush.msra.mxu3 %v1346_v4  ;;  %v1411_v26 = vand.u32 4294901760, %v1388_v19  ;;  %v1416_v28 = vsub.f32 %v32_v12, %v1382_v17  ;;  %v1430_v33 = vand.u32 4294901760, %v1391_v20 }
   0x8   :  { %1965 = vst [vmem:[#allocation7_spill] sm:$0xff] %v1380_v16  ;;  %45 = vmatpush.msra.mxu0 %v1348_v5  ;;  %223 = vmatpush.msra.mxu2 %v1377_v15  ;;  %v108_v30 = vsub.f32 %v1373_v14, %v1401_v23  ;;  %v114_v31 = vsub.f32 %v1377_v15, %v1404_v24 }
   0x9   :  { %1966 = vst [vmem:[#allocation8_spill] sm:$0xff] %v1388_v19  ;;  %v120_v32 = vsub.f32 %v1380_v16, %v1407_v25 }
   0xa   :  { %1967 = vst [vmem:[#allocation9_spill] sm:$0xff] %v1391_v20 }
   0xb   :  { %1968 = vst [vmem:[#allocation10_spill] sm:$0xff] %v1396_v22 }
   0xc   :  { %1969 = vst [vmem:[#allocation11_spill] sm:$0xff] %v1416_v28 }
   0xd   :  { %9 = vsyncpa [#allocation3], 0  ;;  %292 = vmatpush.msra.mxu3 %v1348_v5  ;;  %v1434_v34 = vand.u32 4294901760, %v1396_v22  ;;  %v1437_v35 = vsub.f32 %v31_v13, %v1393_v21  ;;  %v28_v36 = vld [vmem:[%s1946_s2 + $0x28] sm:$0xff]  ;;  %47 = vmatpush.msra.mxu0 %v1359_v9  ;;  %v1443_v37 = vand.u32 4294901760, %v108_v30  ;;  %v1446_v38 = vand.u32 4294901760, %v114_v31 }
   0xe   :  { %226 = vmatpush.msra.mxu2 %v1380_v16  ;;  %v126_v39 = vsub.f32 %v1388_v19, %v1411_v26  ;;  %v1450_v40 = vand.u32 4294901760, %v29_v29  ;;  %v1454_v41 = vand.u32 4294901760, %v1416_v28  ;;  %v1457_v42 = vsub.f32 %v30_v18, %v1413_v27  ;;  %v27_v43 = vld [vmem:[%s1946_s2 + $0x20] sm:$0xff]  ;;  %v26_v49 = vld [vmem:[%s1946_s2 + $0x18] sm:$0xff]  ;;  %v25_v55 = vld [vmem:[%s1946_s2 + $0x10] sm:$0xff]  ;;  %s1253_s11 = sshll.u32 %s1948_s4, 4  ;;  %s1254_s11 = int_to_ptr.hbm [resolvable:$true] %s1253_s11 }
   0xf   :  { %1970 = vst [vmem:[#allocation12_spill] sm:$0xff] %v1437_v35  ;;  %294 = vmatpush.msra.mxu3 %v1359_v9  ;;  %49 = vmatpush.msra.mxu0 %v1361_v10  ;;  %v1464_v44 = vand.u32 4294901760, %v120_v32  ;;  %v132_v45 = vsub.f32 %v1391_v20, %v1430_v33  ;;  %v1468_v46 = vand.u32 4294901760, %v28_v36  ;;  %v138_v47 = vsub.f32 %v1396_v22, %v1434_v34  ;;  %v1502_v56 = vld [vmem:[%s1944_s0] sm:$0xff]  ;;  %v24_v62 = vld [vmem:[%s1946_s2 + $0x8] sm:$0xff]  ;;  %s1308_s12 = smov 128  }
  0x10   :  { %1971 = vst [vmem:[#allocation13_spill] sm:$0xff] %v1457_v42  ;;  %110 = vmatpush.msra.mxu1 %v1443_v37  ;;  %229 = vmatpush.msra.mxu2 %v1388_v19  ;;  %v1475_v48 = vand.u32 4294901760, %v1437_v35  ;;  %v1482_v50 = vand.u32 4294901760, %v126_v39  ;;  %v1484_v51 = vand.u32 4294901760, %v27_v43  ;;  %v1487_v52 = vsub.f32 %v29_v29, %v1450_v40  ;;  %v23_v8 = vld [vmem:[%s1946_s2] sm:$0xff]  ;;  %v1565_v31 = vld [vmem:[%s1944_s0 + $0x8] sm:$0xff] }
  0x11   :  { %296 = vmatpush.msra.mxu3 %v1361_v10  ;;  %51 = vmatpush.msra.mxu0 %v1363_v11  ;;  %v144_v53 = vsub.f32 %v1416_v28, %v1454_v41  ;;  %v1494_v54 = vand.u32 4294901760, %v1457_v42  ;;  %v1506_v57 = vand.u32 4294901760, %v132_v45  ;;  %v1508_v58 = vand.u32 4294901760, %v26_v49  ;;  %s1309_s13 = smov 8  }
  0x12   :  { %116 = vmatpush.msra.mxu1 %v1446_v38  ;;  %1972 = vst [vmem:[#allocation14_spill] sm:$0xff] %v1487_v52  ;;  %232 = vmatpush.msra.mxu2 %v1391_v20  ;;  %v1511_v59 = vsub.f32 %v28_v36, %v1468_v46  ;;  %v1515_v60 = vand.u32 4294901760, %v138_v47  ;;  %v150_v61 = vsub.f32 %v1437_v35, %v1475_v48  ;;  %v1524_v63 = vand.u32 4294901760, %v25_v55 }
  0x13   :  { %298 = vmatpush.msra.mxu3 %v1363_v11  ;;  %53 = vmatpush.msra.mxu0 %v1382_v17  ;;  %v1527_v0 = vand.u32 4294901760, %v1487_v52  ;;  %v1530_v1 = vsub.f32 %v27_v43, %v1484_v51  ;;  %v1533_v2 = vand.u32 4294901760, %v1502_v56  ;;  %v1537_v6 = vand.u32 4294901760, %v144_v53 }
  0x14   :  { %122 = vmatpush.msra.mxu1 %v1464_v44  ;;  %1973 = vst [vmem:[#allocation15_spill] sm:$0xff] %v1511_v59  ;;  %235 = vmatpush.msra.mxu2 %v1396_v22  ;;  %v156_v7 = vsub.f32 %v1457_v42, %v1494_v54  ;;  %v1546_v12 = vand.u32 4294901760, %v24_v62  ;;  %v1549_v13 = vand.u32 4294901760, %v1511_v59  ;;  %v1552_v18 = vsub.f32 %v26_v49, %v1508_v58 }
  0x15   :  { %300 = vmatpush.msra.mxu3 %v1382_v17  ;;  %55 = vmatpush.msra.mxu0 %v1393_v21  ;;  %1974 = vst [vmem:[#allocation16_spill] sm:$0xff] %v1530_v1  ;;  %v1556_v29 = vsub.f32 %v1502_v56, %v1533_v2  ;;  %v1560_v30 = vand.u32 4294901760, %v150_v61  ;;  %v162_v32 = vsub.f32 %v1487_v52, %v1527_v0  ;;  %v1571_v36 = vand.u32 4294901760, %v23_v8 }
  0x16   :  { %128 = vmatpush.msra.mxu1 %v1482_v50  ;;  %238 = vmatpush.msra.mxu2 %v1416_v28  ;;  %1975 = vst [vmem:[#allocation17_spill] sm:$0xff] %v1552_v18  ;;  %v1574_v39 = vand.u32 4294901760, %v1530_v1  ;;  %v1577_v43 = vsub.f32 %v25_v55, %v1524_v63  ;;  %v1581_v45 = vand.u32 4294901760, %v156_v7  ;;  %v168_v49 = vsub.f32 %v1511_v59, %v1549_v13 }
  0x17   :  { %302 = vmatpush.msra.mxu3 %v1393_v21  ;;  %57 = vmatpush.msra.mxu0 %v1413_v27  ;;  %v74_v47 = vand.u32 4294901760, %v1556_v29  ;;  %v1589_v53 = vand.u32 4294901760, %v1552_v18  ;;  %v1592_v55 = vsub.f32 %v24_v62, %v1546_v12  ;;  %v1595_v61 = vand.u32 4294901760, %v1565_v31 }
  0x18   :  { %134 = vmatpush.msra.mxu1 %v1506_v57  ;;  %241 = vmatpush.msra.mxu2 %v1437_v35  ;;  %1976 = vst [vmem:[#allocation18_spill] sm:$0xff] %v1577_v43  ;;  %v1601_v7 = vand.u32 4294901760, %v162_v32  ;;  %v1606_v35 = vand.u32 4294901760, %v1577_v43  ;;  %v1609_v62 = vsub.f32 %v23_v8, %v1571_v36  ;;  %v1616_v32 = vand.u32 4294901760, %v168_v49 }
  0x19   :  { %304 = vmatpush.msra.mxu3 %v1413_v27  ;;  %59 = vmatpush.msra.mxu0 %v1450_v40  ;;  %v180_v28 = vsub.f32 %v1552_v18, %v1589_v53  ;;  %v1621_v22 = vand.u32 4294901760, %v1592_v55  ;;  %v1625_v8 = vsub.f32 %v1565_v31, %v1595_v61  ;;  %vm989_vm0 = vcmask 1043456  }
  0x1a   :  { %140 = vmatpush.msra.mxu1 %v1515_v60  ;;  %244 = vmatpush.msra.mxu2 %v1457_v42  ;;  %v174_v42 = vsub.f32 %v1530_v1, %v1574_v39  ;;  %v1636_v20 = vand.u32 4294901760, %v1609_v62  ;;  %vm976_vm3 = vcmask 31744  }
  0x1b   :  { %306 = vmatpush.msra.mxu3 %v1450_v40  ;;  %61 = vmatpush.msra.mxu0 %v1468_v46  ;;  %v192_v16 = vsub.f32 %v1592_v55, %v1621_v22  ;;  %v82_v15 = vand.u32 4294901760, %v1625_v8 }
  0x1c   :  { %146 = vmatpush.msra.mxu1 %v1537_v6  ;;  %247 = vmatpush.msra.mxu2 %v1487_v52  ;;  %v75_v52 = vsub.f32 %v1556_v29, %v74_v47  ;;  %v1631_v49 = vand.u32 4294901760, %v174_v42  ;;  %v1647_v42 = vand.u32 4294901760, %v180_v28 }
  0x1d   :  { %308 = vmatpush.msra.mxu3 %v1468_v46  ;;  %63 = vmatpush.msra.mxu0 %v1484_v51  ;;  %v83_v14 = vsub.f32 %v1625_v8, %v82_v15 }
  0x1e   :  { %152 = vmatpush.msra.mxu1 %v1560_v30  ;;  %250 = vmatpush.msra.mxu2 %v1511_v59  ;;  %v186_v59 = vsub.f32 %v1577_v43, %v1606_v35  ;;  %v76_v19 = vand.u32 4294901760, %v75_v52 }
  0x1f   :  { %310 = vmatpush.msra.mxu3 %v1484_v51  ;;  %65 = vmatpush.msra.mxu0 %v1508_v58 }
  0x20   :  { %158 = vmatpush.msra.mxu1 %v1581_v45  ;;  %253 = vmatpush.msra.mxu2 %v1530_v1  ;;  %v1643_v1 = vld [vmem:[%s1944_s0 + $0x10] sm:$0xff]  ;;  %v1656_v52 = vand.u32 4294901760, %v186_v59 }
  0x21   :  { %312 = vmatpush.msra.mxu3 %v1508_v58  ;;  %67 = vmatpush.msra.mxu0 %v1524_v63  ;;  %v1661_v28 = vand.u32 4294901760, %v1643_v1 }
  0x22   :  { %164 = vmatpush.msra.mxu1 %v1601_v7  ;;  %256 = vmatpush.msra.mxu2 %v1552_v18  ;;  %v198_v18 = vsub.f32 %v1609_v62, %v1636_v20 }
  0x23   :  { %314 = vmatpush.msra.mxu3 %v1524_v63  ;;  %69 = vmatpush.msra.mxu0 %v1546_v12 }
  0x24   :  { %170 = vmatpush.msra.mxu1 %v1616_v32  ;;  %259 = vmatpush.msra.mxu2 %v1577_v43  ;;  %v1666_v43 = vand.u32 4294901760, %v192_v16  ;;  %v1673_v59 = vand.u32 4294901760, %v198_v18  ;;  %v84_v16 = vand.u32 4294901760, %v83_v14  ;;  %v1685_v18 = vld [vmem:[%s1944_s0 + $0x18] sm:$0xff] }
  0x25   :  { %316 = vmatpush.msra.mxu3 %v1546_v12  ;;  %71 = vmatpush.msra.mxu0 %v1571_v36  ;;  %v1693_v14 = vand.u32 4294901760, %v1685_v18 }
  0x26   :  { %176 = vmatpush.msra.mxu1 %v1631_v49  ;;  %77 = vmatmul.f32.vlgmr.msra.gmra.mxu0 %v76_v19  ;;  %v89_v19 = vsub.f32 %v1643_v1, %v1661_v28 }
  0x27   :  { %262 = vmatpush.msra.mxu2 %v1592_v55  ;;  %347 = vmatpush.msrb.mxu0 %v1401_v23 }
  0x28   :  { %182 = vmatpush.msra.mxu1 %v1647_v42  ;;  %318 = vmatpush.msra.mxu3 %v1571_v36 }
  0x29   :  { %265 = vmatpush.msra.mxu2 %v1609_v62  ;;  %351 = vmatpush.msrb.mxu0 %v1404_v24 }
  0x2a   :  { %188 = vmatpush.msra.mxu1 %v1656_v52  ;;  %268 = vmatmul.f32.vlgmr.msra.gmra.mxu2 %v1556_v29  ;;  %v90_v29 = vand.u32 4294901760, %v89_v19 }
  0x2b   :  { %322 = vmatmul.f32.vlgmr.msra.gmra.mxu3 %v74_v47  ;;  %479 = vmatpush.msrb.mxu2 %v1344_v3 }
  0x2c   :  { %194 = vmatpush.msra.mxu1 %v1666_v43  ;;  %355 = vmatpush.msrb.mxu0 %v1407_v25 }
  0x2d   :  { %548 = vmatpush.msrb.mxu3 %v1443_v37  ;;  %481 = vmatpush.msrb.mxu2 %v1346_v4  ;;  %v91_v37 = vsub.f32 %v89_v19, %v90_v29 }
  0x2e   :  { %200 = vmatpush.msra.mxu1 %v1673_v59  ;;  %359 = vmatpush.msrb.mxu0 %v1411_v26 }
  0x2f   :  { %554 = vmatpush.msrb.mxu3 %v1446_v38  ;;  %85 = vmatmul.f32.gmra.mxu0 %v84_v16  ;;  %v97_v38 = vsub.f32 %v1685_v18, %v1693_v14  ;;  %v1979_v16 = vld [vmem:[#allocation7_spill] sm:$0xff] }
  0x30   :  { %202 = vmatmul.f32.vlgmr.msra.gmra.mxu1 %v1533_v2  ;;  %483 = vmatpush.msrb.mxu2 %v1348_v5 }
  0x31   :  { %426 = vmatpush.msrb.mxu1 %v1344_v3  ;;  %363 = vmatpush.msrb.mxu0 %v1430_v33 }
  0x32   :  { %560 = vmatpush.msrb.mxu3 %v1464_v44  ;;  %485 = vmatpush.msrb.mxu2 %v1359_v9  ;;  %v92_v44 = vand.u32 4294901760, %v91_v37  ;;  %v477_v37 = vmul.f32 %v1685_v18, %v1685_v18 }
  0x33   :  { %428 = vmatpush.msrb.mxu1 %v1346_v4  ;;  %367 = vmatpush.msrb.mxu0 %v1434_v34 }
  0x34   :  { %566 = vmatpush.msrb.mxu3 %v1482_v50  ;;  %273 = vmatmul.f32.gmra.mxu2 %v1625_v8  ;;  %v98_v50 = vand.u32 4294901760, %v97_v38 }
  0x35   :  { %328 = vmatmul.f32.gmra.mxu3 %v82_v15  ;;  %430 = vmatpush.msrb.mxu1 %v1348_v5  ;;  %v474_v15 = vmul.f32 %v1502_v56, %v1502_v56 }
  0x36   :  { %487 = vmatpush.msrb.mxu2 %v1361_v10  ;;  %371 = vmatpush.msrb.mxu0 %v1454_v41 }
  0x37   :  { %572 = vmatpush.msrb.mxu3 %v1506_v57  ;;  %432 = vmatpush.msrb.mxu1 %v1359_v9  ;;  %v99_v57 = vsub.f32 %v97_v38, %v98_v50 }
  0x38   :  { %489 = vmatpush.msrb.mxu2 %v1363_v11  ;;  %375 = vmatpush.msrb.mxu0 %v1475_v48 }
  0x39   :  { %578 = vmatpush.msrb.mxu3 %v1515_v60  ;;  %93 = vmatmul.f32.gmra.mxu0 %v92_v44  ;;  %v1725_v60 = vand.u32 4294901760, %v474_v15  ;;  %v100_v56 = vand.u32 4294901760, %v99_v57 }
  0x3a   :  { %206 = vmatmul.f32.gmra.mxu1 %v1595_v61  ;;  %491 = vmatpush.msrb.mxu2 %v1382_v17 }
  0x3b   :  { %434 = vmatpush.msrb.mxu1 %v1361_v10  ;;  %379 = vmatpush.msrb.mxu0 %v1494_v54 }
  0x3c   :  { %584 = vmatpush.msrb.mxu3 %v1537_v6  ;;  %493 = vmatpush.msrb.mxu2 %v1393_v21  ;;  %v1736_v6 = vsub.f32 %v474_v15, %v1725_v60 }
  0x3d   :  { %436 = vmatpush.msrb.mxu1 %v1363_v11  ;;  %383 = vmatpush.msrb.mxu0 %v1527_v0 }
  0x3e   :  { %590 = vmatpush.msrb.mxu3 %v1560_v30  ;;  %278 = vmatmul.f32.gmra.mxu2 %v89_v19  ;;  %v475_v30 = vmul.f32 %v1565_v31, %v1565_v31 }
  0x3f   :  { %334 = vmatmul.f32.gmra.mxu3 %v90_v29  ;;  %438 = vmatpush.msrb.mxu1 %v1382_v17  ;;  %v1980_v29 = vld [vmem:[#allocation8_spill] sm:$0xff] }
  0x40   :  { %495 = vmatpush.msrb.mxu2 %v1413_v27  ;;  %387 = vmatpush.msrb.mxu0 %v1549_v13  ;;  %v1750_v47 = vand.u32 4294901760, %v475_v30 }
  0x41   :  { %596 = vmatpush.msrb.mxu3 %v1581_v45  ;;  %440 = vmatpush.msrb.mxu1 %v1393_v21  ;;  %v512_v45 = vand.u32 4294901760, %v1736_v6 }
  0x42   :  { %497 = vmatpush.msrb.mxu2 %v1450_v40  ;;  %391 = vmatpush.msrb.mxu0 %v1574_v39 }
  0x43   :  { %602 = vmatpush.msrb.mxu3 %v1601_v7  ;;  %101 = vmatmul.f32.gmra.mxu0 %v100_v56  ;;  %v513_v31 = vsub.f32 %v1736_v6, %v512_v45  ;;  %v1762_v7 = vsub.f32 %v475_v30, %v1750_v47 }
  0x44   :  { %210 = vmatmul.f32.gmra.mxu1 %v1661_v28  ;;  %499 = vmatpush.msrb.mxu2 %v1468_v46 }
  0x45   :  { %442 = vmatpush.msrb.mxu1 %v1413_v27  ;;  %395 = vmatpush.msrb.mxu0 %v1589_v53  ;;  %v514_v8 = vand.u32 4294901760, %v513_v31 }
  0x46   :  { %608 = vmatpush.msrb.mxu3 %v1616_v32  ;;  %501 = vmatpush.msrb.mxu2 %v1484_v51  ;;  %v476_v32 = vmul.f32 %v1643_v1, %v1643_v1 }
  0x47   :  { %444 = vmatpush.msrb.mxu1 %v1450_v40  ;;  %399 = vmatpush.msrb.mxu0 %v1606_v35 }
  0x48   :  { %614 = vmatpush.msrb.mxu3 %v1631_v49  ;;  %283 = vmatmul.f32.gmra.mxu2 %v97_v38  ;;  %v1977_v49 = vld [vmem:[#allocation5_spill] sm:$0xff]  ;;  %v1779_v19 = vand.u32 4294901760, %v476_v32 }
  0x49   :  { %340 = vmatmul.f32.gmra.mxu3 %v98_v50  ;;  %446 = vmatpush.msrb.mxu1 %v1468_v46 }
  0x4a   :  { %503 = vmatpush.msrb.mxu2 %v1508_v58  ;;  %403 = vmatpush.msrb.mxu0 %v1621_v22 }
  0x4b   :  { %620 = vmatpush.msrb.mxu3 %v1647_v42  ;;  %448 = vmatpush.msrb.mxu1 %v1484_v51  ;;  %v520_v42 = vand.u32 4294901760, %v1762_v7 }
  0x4c   :  { %505 = vmatpush.msrb.mxu2 %v1524_v63  ;;  %407 = vmatpush.msrb.mxu0 %v1636_v20 }
  0x4d   :  { %626 = vmatpush.msrb.mxu3 %v1656_v52  ;;  %214 = vmatmul.f32.gmra.mxu1 %v1693_v14  ;;  %v1978_v52 = vld [vmem:[#allocation6_spill] sm:$0xff] }
  0x4e   :  { %409 = vmatmul.f32.vlgmr.msrb.gmra.mxu0 %v1533_v2  ;;  %450 = vmatpush.msrb.mxu1 %v1508_v58 }
  0x4f   :  { %507 = vmatpush.msrb.mxu2 %v1546_v12  ;;  %632 = vmatpush.msrb.mxu3 %v1666_v43  ;;  %v521_v43 = vsub.f32 %v1762_v7, %v520_v42 }
  0x50   :  { %658 = vmatpush.msra.mxu0 %v1977_v49  ;;  %452 = vmatpush.msrb.mxu1 %v1524_v63 }
  0x51   :  { %509 = vmatpush.msrb.mxu2 %v1571_v36  ;;  %638 = vmatpush.msrb.mxu3 %v1673_v59  ;;  %v1792_v59 = vsub.f32 %v476_v32, %v1779_v19  ;;  %v39_v32 = vld [vmem:[%s1947_s3] sm:$0xf] }
  0x52   :  { %661 = vmatpush.msra.mxu0 %v1978_v52  ;;  %454 = vmatpush.msrb.mxu1 %v1546_v12 }
  0x53   :  { %515 = vmatmul.f32.vlgmr.msrb.gmra.mxu2 %v514_v8  ;;  %640 = vmatmul.f32.vlgmr.msrb.gmra.mxu3 %v1725_v60  ;;  %v528_v38 = vand.u32 4294901760, %v1792_v59 }
  0x54   :  { %785 = vmatpush.msra.mxu2 %v1401_v23  ;;  %664 = vmatpush.msra.mxu0 %v1979_v16  ;;  %v522_v23 = vand.u32 4294901760, %v521_v43 }
  0x55   :  { %456 = vmatpush.msrb.mxu1 %v1571_v36  ;;  %864 = vmatpush.msra.mxu3 %v1344_v3 }
  0x56   :  { %789 = vmatpush.msra.mxu2 %v1404_v24  ;;  %667 = vmatpush.msra.mxu0 %v1980_v29  ;;  %v1981_v24 = vld [vmem:[#allocation9_spill] sm:$0xff] }
  0x57   :  { %458 = vmatmul.f32.vlgmr.msrb.gmra.mxu1 %v1533_v2  ;;  %413 = vmatmul.f32.gmra.mxu0 %v1595_v61  ;;  %v1982_v2 = vld [vmem:[#allocation10_spill] sm:$0xff] }
  0x58   :  { %726 = vmatpush.msra.mxu1 %v1344_v3  ;;  %793 = vmatpush.msra.mxu2 %v1407_v25  ;;  %v1808_v3 = vand.u32 4294901760, %v477_v37  ;;  %v1983_v25 = vld [vmem:[#allocation11_spill] sm:$0xff] }
  0x59   :  { %866 = vmatpush.msra.mxu3 %v1346_v4  ;;  %670 = vmatpush.msra.mxu0 %v1981_v24 }
  0x5a   :  { %728 = vmatpush.msra.mxu1 %v1346_v4  ;;  %797 = vmatpush.msra.mxu2 %v1411_v26  ;;  %v529_v4 = vsub.f32 %v1792_v59, %v528_v38  ;;  %v1822_v26 = vsub.f32 %v477_v37, %v1808_v3 }
  0x5b   :  { %868 = vmatpush.msra.mxu3 %v1348_v5  ;;  %673 = vmatpush.msra.mxu0 %v1982_v2 }
  0x5c   :  { %523 = vmatmul.f32.gmra.mxu2 %v522_v23  ;;  %644 = vmatmul.f32.gmra.mxu3 %v1750_v47 }
  0x5d   :  { %730 = vmatpush.msra.mxu1 %v1348_v5  ;;  %801 = vmatpush.msra.mxu2 %v1430_v33  ;;  %v1984_v5 = vld [vmem:[#allocation12_spill] sm:$0xff]  ;;  %v530_v33 = vand.u32 4294901760, %v529_v4 }
  0x5e   :  { %870 = vmatpush.msra.mxu3 %v1359_v9  ;;  %676 = vmatpush.msra.mxu0 %v1983_v25 }
  0x5f   :  { %732 = vmatpush.msra.mxu1 %v1359_v9  ;;  %805 = vmatpush.msra.mxu2 %v1434_v34  ;;  %v1985_v9 = vld [vmem:[#allocation13_spill] sm:$0xff]  ;;  %v536_v34 = vand.u32 4294901760, %v1822_v26 }
  0x60   :  { %872 = vmatpush.msra.mxu3 %v1361_v10  ;;  %679 = vmatpush.msra.mxu0 %v1984_v5 }
  0x61   :  { %462 = vmatmul.f32.gmra.mxu1 %v1595_v61  ;;  %417 = vmatmul.f32.gmra.mxu0 %v1661_v28  ;;  %v1986_v61 = vld [vmem:[#allocation14_spill] sm:$0xff] }
  0x62   :  { %734 = vmatpush.msra.mxu1 %v1361_v10  ;;  %809 = vmatpush.msra.mxu2 %v1454_v41  ;;  %v537_v10 = vsub.f32 %v1822_v26, %v536_v34  ;;  %v1988_v41 = vld [vmem:[#allocation16_spill] sm:$0xff] }
  0x63   :  { %874 = vmatpush.msra.mxu3 %v1363_v11  ;;  %682 = vmatpush.msra.mxu0 %v1985_v9 }
  0x64   :  { %736 = vmatpush.msra.mxu1 %v1363_v11  ;;  %813 = vmatpush.msra.mxu2 %v1475_v48  ;;  %v1987_v11 = vld [vmem:[#allocation15_spill] sm:$0xff]  ;;  %v1989_v48 = vld [vmem:[#allocation17_spill] sm:$0xff] }
  0x65   :  { %876 = vmatpush.msra.mxu3 %v1382_v17  ;;  %685 = vmatpush.msra.mxu0 %v1986_v61 }
  0x66   :  { %531 = vmatmul.f32.gmra.mxu2 %v530_v33  ;;  %648 = vmatmul.f32.gmra.mxu3 %v1779_v19 }
  0x67   :  { %738 = vmatpush.msra.mxu1 %v1382_v17  ;;  %817 = vmatpush.msra.mxu2 %v1494_v54  ;;  %v538_v17 = vand.u32 4294901760, %v537_v10 }
  0x68   :  { %878 = vmatpush.msra.mxu3 %v1393_v21  ;;  %688 = vmatpush.msra.mxu0 %v1987_v11 }
  0x69   :  { %740 = vmatpush.msra.mxu1 %v1393_v21  ;;  %821 = vmatpush.msra.mxu2 %v1527_v0  ;;  %v1990_v21 = vld [vmem:[#allocation18_spill] sm:$0xff] }
  0x6a   :  { %880 = vmatpush.msra.mxu3 %v1413_v27  ;;  %691 = vmatpush.msra.mxu0 %v1988_v41 }
  0x6b   :  { %466 = vmatmul.f32.gmra.mxu1 %v1661_v28  ;;  %421 = vmatmul.f32.gmra.mxu0 %v1693_v14 }
  0x6c   :  { %742 = vmatpush.msra.mxu1 %v1413_v27  ;;  %825 = vmatpush.msra.mxu2 %v1549_v13 }
  0x6d   :  { %882 = vmatpush.msra.mxu3 %v1450_v40  ;;  %694 = vmatpush.msra.mxu0 %v1989_v48 }
  0x6e   :  { %744 = vmatpush.msra.mxu1 %v1450_v40  ;;  %829 = vmatpush.msra.mxu2 %v1574_v39 }
  0x6f   :  { %884 = vmatpush.msra.mxu3 %v1468_v46  ;;  %697 = vmatpush.msra.mxu0 %v1990_v21 }
  0x70   :  { %539 = vmatmul.f32.gmra.mxu2 %v538_v17  ;;  %652 = vmatmul.f32.gmra.mxu3 %v1808_v3 }
  0x71   :  { %746 = vmatpush.msra.mxu1 %v1468_v46  ;;  %833 = vmatpush.msra.mxu2 %v1589_v53 }
  0x72   :  { %886 = vmatpush.msra.mxu3 %v1484_v51  ;;  %700 = vmatpush.msra.mxu0 %v1592_v55 }
  0x73   :  { %748 = vmatpush.msra.mxu1 %v1484_v51  ;;  %837 = vmatpush.msra.mxu2 %v1606_v35 }
  0x74   :  { %888 = vmatpush.msra.mxu3 %v1508_v58  ;;  %703 = vmatpush.msra.mxu0 %v1609_v62 }
  0x75   :  { %470 = vmatmul.f32.gmra.mxu1 %v1693_v14  ;;  %706 = vmatmul.f32.vlgmr.msra.gmra.mxu0 %v1736_v6 }
  0x76   :  { %750 = vmatpush.msra.mxu1 %v1508_v58  ;;  %841 = vmatpush.msra.mxu2 %v1621_v22 }
  0x77   :  { %890 = vmatpush.msra.mxu3 %v1524_v63 }
  0x78   :  { %752 = vmatpush.msra.mxu1 %v1524_v63  ;;  %845 = vmatpush.msra.mxu2 %v1636_v20 }
  0x79   :  { %892 = vmatpush.msra.mxu3 %v1546_v12  ;;  %847 = vmatmul.f32.vlgmr.msra.gmra.mxu2 %v1725_v60 }
  0x7a   :  { %754 = vmatpush.msra.mxu1 %v1546_v12 }
  0x7b   :  { %894 = vmatpush.msra.mxu3 %v1571_v36 }
  0x7c   :  { %756 = vmatpush.msra.mxu1 %v1571_v36  ;;  %896 = vmatmul.f32.vlgmr.msra.gmra.mxu3 %v1725_v60 }
  0x7d   :  { %760 = vmatmul.f32.vlgmr.msra.gmra.mxu1 %v512_v45  ;;  %711 = vmatmul.f32.gmra.mxu0 %v1762_v7 }
  0x81   :  { %851 = vmatmul.f32.gmra.mxu2 %v1750_v47 }
  0x84   :  { %900 = vmatmul.f32.gmra.mxu3 %v1750_v47 }
  0x85   :  { %766 = vmatmul.f32.gmra.mxu1 %v520_v42  ;;  %716 = vmatmul.f32.gmra.mxu0 %v1792_v59  ;;  %v991_v42 = vsel %vm989_vm0, %v39_v32, 0 }
  0x86   :  { %v1008_v52 = vand.u32 4294901760, %v991_v42 }
  0x88   :  { %1265 = vmatpush.msrb.mxu2 %v1008_v52  ;;  %v1059_v16 = vsub.f32 %v991_v42, %v1008_v52  ;;  %1009 = vmatpush.msrb.mxu0 %v1008_v52 }
  0x89   :  { %855 = vmatmul.f32.gmra.mxu2 %v1779_v19 }
  0x8a   :  { %v1060_v37 = vand.u32 4294901760, %v1059_v16  ;;  %1098 = vmatpush.msra.mxu2 %v1059_v16 }
  0x8c   :  { %904 = vmatmul.f32.gmra.mxu3 %v1779_v19  ;;  %v1061_v4 = vsub.f32 %v1059_v16, %v1060_v37  ;;  %1180 = vmatpush.msra.mxu0 %v1060_v37 }
  0x8d   :  { %772 = vmatmul.f32.gmra.mxu1 %v528_v38  ;;  %721 = vmatmul.f32.gmra.mxu0 %v1822_v26 }
  0x8e   :  { %v1062_v5 = vand.u32 4294901760, %v1061_v4 }
  0x90   :  { %1266 = vmatpush.msrb.mxu3 %v1062_v5  ;;  %1063 = vmatpush.msrb.mxu1 %v1062_v5 }
  0x91   :  { %859 = vmatmul.f32.gmra.mxu2 %v1808_v3 }
  0x92   :  { %1214 = vmatpush.msra.mxu1 %v1008_v52  ;;  %1136 = vmatpush.msra.mxu3 %v1008_v52 }
  0x94   :  { %908 = vmatmul.f32.gmra.mxu3 %v1808_v3 }
  0x95   :  { %778 = vmatmul.f32.gmra.mxu1 %v536_v34 }
  0xa3   :  { %v78_v20 = vpop.f32.mrf.mxu0 }
  0xac   :  { %v86_v22 = vpop.f32.mrf.mxu0 }
  0xad   :  { %v203_v27 = vpop.f32.mrf.mxu1  ;;  %v269_v35 = vpop.f32.mrf.mxu2 }
  0xae   :  { %v323_v40 = vpop.f32.mrf.mxu3  ;;  %v204_v47 = vadd.f32 %v203_v27, %v78_v20 }
  0xb0   :  { %v270_v31 = vadd.f32 %v269_v35, %v204_v47 }
  0xb2   :  { %v324_v19 = vadd.f32 %v323_v40, %v270_v31 }
  0xb6   :  { %v94_v46 = vpop.f32.mrf.mxu0 }
  0xb7   :  { %v207_v51 = vpop.f32.mrf.mxu1  ;;  %v274_v54 = vpop.f32.mrf.mxu2 }
  0xb8   :  { %v329_v58 = vpop.f32.mrf.mxu3  ;;  %v208_v43 = vadd.f32 %v207_v51, %v86_v22 }
  0xba   :  { %v275_v38 = vadd.f32 %v274_v54, %v208_v43 }
  0xbc   :  { %v330_v9 = vadd.f32 %v329_v58, %v275_v38 }
  0xc0   :  { %v1893_v63 = vpop.f32.mrf.mxu0 }
  0xc1   :  { %v211_v0 = vpop.f32.mrf.mxu1  ;;  %v279_v12 = vpop.f32.mrf.mxu2 }
  0xc2   :  { %v1895_v13 = vpop.f32.mrf.mxu3  ;;  %v212_v34 = vadd.f32 %v211_v0, %v94_v46 }
  0xc4   :  { %v280_v20 = vadd.f32 %v279_v12, %v212_v34 }
  0xca   :  { %v1897_v36 = vpop.f32.mrf.mxu1 }
  0xcb   :  { %v410_v39 = vpop.f32.mrf.mxu0  ;;  %v1899_v53 = vpop.f32.mrf.mxu2  ;;  %v216_v46 = vadd.f32 %v1897_v36, %v1893_v63 }
  0xcc   :  { %v1901_v55 = vpop.f32.mrf.mxu3  ;;  %v411_v23 = vadd.f32 %v410_v39, %v324_v19  ;;  %v336_v39 = vadd.f32 %v1895_v13, %v280_v20 }
  0xcd   :  { %v285_v47 = vadd.f32 %v1899_v53, %v216_v46 }
  0xcf   :  { %v342_v19 = vadd.f32 %v1901_v55, %v285_v47 }
  0xd4   :  { %v459_v62 = vpop.f32.mrf.mxu1  ;;  %v414_v28 = vpop.f32.mrf.mxu0 }
  0xd5   :  { %v460_v2 = vadd.f32 %v459_v62, %v411_v23  ;;  %v415_v17 = vadd.f32 %v414_v28, %v330_v9 }
  0xd6   :  { %v516_v14 = vpop.f32.mrf.mxu2  ;;  %v641_v44 = vpop.f32.mrf.mxu3 }
  0xd7   :  { %v642_v59 = vadd.f32 %v641_v44, %v516_v14  ;;  %v912_v61 = vmul.f32 0.03125, %v460_v2 }
  0xd9   :  { %v920_v22 = vmul.f32 %v912_v61, %v912_v61 }
  0xde   :  { %v463_v50 = vpop.f32.mrf.mxu1  ;;  %v1903_v15 = vpop.f32.mrf.mxu0 }
  0xdf   :  { %v524_v57 = vpop.f32.mrf.mxu2  ;;  %v645_v60 = vpop.f32.mrf.mxu3  ;;  %v464_v27 = vadd.f32 %v463_v50, %v415_v17  ;;  %v419_v12 = vadd.f32 %v1903_v15, %v336_v39 }
  0xe0   :  { %v646_v11 = vadd.f32 %v645_v60, %v524_v57 }
  0xe1   :  { %v913_v62 = vmul.f32 0.03125, %v464_v27 }
  0xe3   :  { %v921_v32 = vmul.f32 %v913_v62, %v913_v62 }
  0xe8   :  { %v1905_v56 = vpop.f32.mrf.mxu1  ;;  %v1907_v6 = vpop.f32.mrf.mxu0 }
  0xe9   :  { %v532_v30 = vpop.f32.mrf.mxu2  ;;  %v649_v45 = vpop.f32.mrf.mxu3  ;;  %v423_v23 = vadd.f32 %v1907_v6, %v342_v19 }
  0xea   :  { %v650_v28 = vadd.f32 %v649_v45, %v532_v30 }
  0xf2   :  { %v1909_v7 = vpop.f32.mrf.mxu1  ;;  %v707_v8 = vpop.f32.mrf.mxu0 }
  0xf3   :  { %v1914_v49 = vpop.f32.mrf.mxu2  ;;  %v653_v29 = vpop.f32.mrf.mxu3  ;;  %v708_v24 = vadd.f32 %v707_v8, %v642_v59  ;;  %v468_v8 = vadd.f32 %v1905_v56, %v419_v12 }
  0xf4   :  { %v654_v16 = vadd.f32 %v653_v29, %v1914_v49 }
  0xf5   :  { %v914_v30 = vmul.f32 0.03125, %v468_v8 }
  0xf7   :  { %v922_v2 = vmul.f32 %v914_v30, %v914_v30 }
  0xfa   :  { %v761_v3 = vpop.f32.mrf.mxu1  ;;  %v712_v25 = vpop.f32.mrf.mxu0 }
  0xfb   :  { %v762_v26 = vadd.f32 %v761_v3, %v708_v24  ;;  %v713_v21 = vadd.f32 %v712_v25, %v646_v11  ;;  %v472_v3 = vadd.f32 %v1909_v7, %v423_v23 }
  0xfc   :  { %v848_v33 = vpop.f32.mrf.mxu2 }
  0xfd   :  { %v849_v10 = vadd.f32 %v848_v33, %v762_v26  ;;  %v915_v49 = vmul.f32 0.03125, %v472_v3 }
  0xff   :  { %v897_v41 = vpop.f32.mrf.mxu3 }
 0x100   :  { %v898_v48 = vadd.f32 %v897_v41, %v849_v10 }
 0x102   :  { %v916_v35 = vmul.f32 0.03125, %v898_v48  ;;  %v767_v40 = vpop.f32.mrf.mxu1  ;;  %v717_v58 = vpop.f32.mrf.mxu0  ;;  %v923_v48 = vmul.f32 %v915_v49, %v915_v49 }
 0x103   :  { %v768_v51 = vadd.f32 %v767_v40, %v713_v21  ;;  %v718_v31 = vadd.f32 %v717_v58, %v650_v28 }
 0x104   :  { %v924_v54 = vsub.f32 %v916_v35, %v920_v22  ;;  %v852_v0 = vpop.f32.mrf.mxu2 }
 0x105   :  { %v853_v44 = vadd.f32 %v852_v0, %v768_v51 }
 0x106   :  { %v928_v14 = vmax.f32 %v924_v54, 0.0 }
 0x107   :  { %v901_v57 = vpop.f32.mrf.mxu3 }
 0x108   :  { %v932_v60 = vadd.f32 1e-05, %v928_v14  ;;  %v902_v50 = vadd.f32 %v901_v57, %v853_v44 }
 0x10a   :  { %1271 = vrsqrt.f32 %v932_v60  ;;  %v917_v63 = vmul.f32 0.03125, %v902_v50  ;;  %v773_v36 = vpop.f32.mrf.mxu1  ;;  %v722_v43 = vpop.f32.mrf.mxu0  ;;  %vm942_vm2 = vweird.f32 %v932_v60 }
 0x10b   :  { %v774_v42 = vadd.f32 %v773_v36, %v718_v31  ;;  %v723_v38 = vadd.f32 %v722_v43, %v654_v16 }
 0x10c   :  { %v925_v13 = vsub.f32 %v917_v63, %v921_v32  ;;  %v856_v52 = vpop.f32.mrf.mxu2 }
 0x10d   :  { %v857_v15 = vadd.f32 %v856_v52, %v774_v42 }
 0x10e   :  { %v929_v45 = vmax.f32 %v925_v13, 0.0 }
 0x10f   :  { %v905_v59 = vpop.f32.mrf.mxu3 }
 0x110   :  { %v1272_v53 = vpop.eup %1271  ;;  %v933_v37 = vadd.f32 1e-05, %v929_v45  ;;  %v906_v56 = vadd.f32 %v905_v59, %v857_v15 }
 0x111   :  { %v937_v24 = vmul.f32 %v1272_v53, %v932_v60  ;;  %vm943_vm1 = vweird.f32 %v1272_v53 }
 0x112   :  { %1273 = vrsqrt.f32 %v933_v37  ;;  %v918_v4 = vmul.f32 0.03125, %v906_v56  ;;  %v779_v55 = vpop.f32.mrf.mxu1  ;;  %vm944_vm4 = vmor %vm942_vm2, %vm943_vm1  ;;  %vm952_vm6 = vweird.f32 %v933_v37 }
 0x113   :  { %v938_v25 = vmul.f32 %v1272_v53, %v937_v24  ;;  %v780_v26 = vadd.f32 %v779_v55, %v723_v38 }
 0x114   :  { %v926_v5 = vsub.f32 %v918_v4, %v922_v2  ;;  %v860_v9 = vpop.f32.mrf.mxu2 }
 0x115   :  { %v939_v33 = vmul.f32 0.5, %v938_v25  ;;  %v861_v34 = vadd.f32 %v860_v9, %v780_v26 }
 0x116   :  { %v930_v29 = vmax.f32 %v926_v5, 0.0 }
 0x117   :  { %v940_v61 = vsub.f32 1.5, %v939_v33  ;;  %v909_v6 = vpop.f32.mrf.mxu3 }
 0x118   :  { %v1274_v10 = vpop.eup %1273  ;;  %v934_v11 = vadd.f32 1e-05, %v930_v29  ;;  %v910_v41 = vadd.f32 %v909_v6, %v861_v34 }
 0x119   :  { %v941_v17 = vmul.f32 %v1272_v53, %v940_v61  ;;  %v947_v7 = vmul.f32 %v1274_v10, %v933_v37  ;;  %vm953_vm5 = vweird.f32 %v1274_v10 }
 0x11a   :  { %1275 = vrsqrt.f32 %v934_v11  ;;  %v919_v21 = vmul.f32 0.03125, %v910_v41  ;;  %vm954_vm7 = vmor %vm952_vm6, %vm953_vm5  ;;  %vm962_vm9 = vweird.f32 %v934_v11 }
 0x11b   :  { %v948_v20 = vmul.f32 %v1274_v10, %v947_v7  ;;  %v945_v22 = vsel %vm944_vm4, %v1272_v53, %v941_v17 }
 0x11c   :  { %v927_v27 = vsub.f32 %v919_v21, %v923_v48  ;;  %v978_v35 = vsel %vm976_vm3, %v945_v22, 0 }
 0x11d   :  { %v949_v40 = vmul.f32 0.5, %v948_v20  ;;  %v1010_v51 = vand.u32 4294901760, %v978_v35 }
 0x11e   :  { %v931_v54 = vmax.f32 %v927_v27, 0.0 }
 0x11f   :  { %v950_v58 = vsub.f32 1.5, %v949_v40  ;;  %v1011_v46 = vsub.f32 %v978_v35, %v1010_v51  ;;  %1065 = vmatmul.f32.vlgmr.msrb.gmra.mxu1 %v1010_v51  ;;  %v1270_v40 = vld [vmem:[%s1945_s1] ss:$0 sm:$0xff] }
 0x120   :  { %v1276_v0 = vpop.eup %1275  ;;  %v935_v39 = vadd.f32 1e-05, %v931_v54 }
 0x121   :  { %v951_v62 = vmul.f32 %v1274_v10, %v950_v58  ;;  %v957_v14 = vmul.f32 %v1276_v0, %v934_v11  ;;  %v1012_v44 = vand.u32 4294901760, %v1011_v46  ;;  %vm963_vm8 = vweird.f32 %v1276_v0  ;;  %v1279_v58 = vld [vmem:[%s1944_s0] sm:$0xff] }
 0x122   :  { %1277 = vrsqrt.f32 %v935_v39  ;;  %vm964_vm10 = vmor %vm962_vm9, %vm963_vm8  ;;  %vm972_vm12 = vweird.f32 %v935_v39 }
 0x123   :  { %v958_v28 = vmul.f32 %v1276_v0, %v957_v14  ;;  %v1013_v57 = vsub.f32 %v1011_v46, %v1012_v44  ;;  %v955_v12 = vsel %vm954_vm7, %v1274_v10, %v951_v62 }
 0x124   :  { %v981_v60 = vsel %vm976_vm3, %v955_v12, 0 }
 0x125   :  { %v959_v50 = vmul.f32 0.5, %v958_v28  ;;  %v1014_v47 = vand.u32 4294901760, %v1013_v57  ;;  %v1018_v31 = vand.u32 4294901760, %v981_v60 }
 0x127   :  { %v960_v32 = vsub.f32 1.5, %v959_v50  ;;  %1015 = vmatmul.f32.vlgmr.msrb.gmra.mxu0 %v1014_v47  ;;  %1069 = vmatmul.f32.gmra.mxu1 %v1018_v31  ;;  %v1019_v8 = vsub.f32 %v981_v60, %v1018_v31  ;;  %v1280_v50 = vld [vmem:[%s1944_s0 + $0x8] sm:$0xff]  ;;  %s1307_s0 = smov [#allocation2]  }
 0x128   :  { %v1278_v63 = vpop.eup %1277  ;;  %s1251_s1 = sshll.u32 %s1307_s0, 4  ;;  %s1252_s1 = int_to_ptr.vmem [resolvable:$true] %s1251_s1 }
 0x129   :  { %v961_v36 = vmul.f32 %v1276_v0, %v960_v32  ;;  %v967_v42 = vmul.f32 %v1278_v63, %v935_v39  ;;  %v1020_v13 = vand.u32 4294901760, %v1019_v8  ;;  %vm973_vm11 = vweird.f32 %v1278_v63 }
 0x12a   :  { %vm974_vm13 = vmor %vm972_vm12, %vm973_vm11 }
 0x12b   :  { %v968_v52 = vmul.f32 %v1278_v63, %v967_v42  ;;  %v1021_v19 = vsub.f32 %v1019_v8, %v1020_v13  ;;  %v965_v30 = vsel %vm964_vm10, %v1276_v0, %v961_v36 }
 0x12c   :  { %v984_v45 = vsel %vm976_vm3, %v965_v30, 0 }
 0x12d   :  { %v969_v43 = vmul.f32 0.5, %v968_v52  ;;  %v1022_v15 = vand.u32 4294901760, %v1021_v19  ;;  %v1026_v16 = vand.u32 4294901760, %v984_v45 }
 0x12f   :  { %v970_v59 = vsub.f32 1.5, %v969_v43  ;;  %1023 = vmatmul.f32.gmra.mxu0 %v1022_v15  ;;  %v1027_v53 = vsub.f32 %v984_v45, %v1026_v16  ;;  %1073 = vmatmul.f32.vlgmr.msrb.gmra.mxu3 %v1026_v16 }
 0x130   :  { %1216 = vmatmul.f32.vlgmr.msra.gmra.mxu1 %v1010_v51 }
 0x131   :  { %v971_v23 = vmul.f32 %v1278_v63, %v970_v59  ;;  %v1028_v37 = vand.u32 4294901760, %v1027_v53 }
 0x133   :  { %v1029_v56 = vsub.f32 %v1027_v53, %v1028_v37  ;;  %v975_v24 = vsel %vm974_vm13, %v1278_v63, %v971_v23 }
 0x134   :  { %v987_v38 = vsel %vm976_vm3, %v975_v24, 0 }
 0x135   :  { %v1030_v2 = vand.u32 4294901760, %v1029_v56  ;;  %v1034_v3 = vand.u32 4294901760, %v987_v38 }
 0x137   :  { %1031 = vmatmul.f32.vlgmr.msrb.gmra.mxu2 %v1030_v2  ;;  %1077 = vmatmul.f32.gmra.mxu3 %v1034_v3  ;;  %v1035_v4 = vsub.f32 %v987_v38, %v1034_v3 }
 0x138   :  { %1182 = vmatmul.f32.vlgmr.msra.gmra.mxu0 %v1010_v51  ;;  %1220 = vmatmul.f32.gmra.mxu1 %v1018_v31 }
 0x139   :  { %v1036_v55 = vand.u32 4294901760, %v1035_v4 }
 0x13b   :  { %v1037_v25 = vsub.f32 %v1035_v4, %v1036_v55 }
 0x13d   :  { %v1038_v26 = vand.u32 4294901760, %v1037_v25 }
 0x13f   :  { %1039 = vmatmul.f32.gmra.mxu2 %v1038_v26  ;;  %1140 = vmatmul.f32.vlgmr.msra.gmra.mxu3 %v1012_v44 }
 0x140   :  { %1186 = vmatmul.f32.gmra.mxu0 %v1018_v31  ;;  %1224 = vmatmul.f32.gmra.mxu1 %v1026_v16 }
 0x147   :  { %1101 = vmatmul.f32.vlgmr.msra.gmra.mxu2 %v1011_v46  ;;  %1146 = vmatmul.f32.gmra.mxu3 %v1020_v13 }
 0x148   :  { %1190 = vmatmul.f32.gmra.mxu0 %v1026_v16  ;;  %1228 = vmatmul.f32.gmra.mxu1 %v1034_v3 }
 0x14f   :  { %1106 = vmatmul.f32.gmra.mxu2 %v1019_v8  ;;  %1152 = vmatmul.f32.gmra.mxu3 %v1028_v37 }
 0x150   :  { %1194 = vmatmul.f32.gmra.mxu0 %v1034_v3 }
 0x157   :  { %1111 = vmatmul.f32.gmra.mxu2 %v1027_v53  ;;  %1158 = vmatmul.f32.gmra.mxu3 %v1036_v55 }
 0x15f   :  { %1116 = vmatmul.f32.gmra.mxu2 %v1035_v4 }
 0x19c   :  { %v1066_v9 = vpop.f32.mrf.mxu1 }
 0x1a4   :  { %v1016_v33 = vpop.f32.mrf.mxu0  ;;  %v1070_v61 = vpop.f32.mrf.mxu1 }
 0x1a5   :  { %v1067_v41 = vadd.f32 %v1066_v9, %v1016_v33 }
 0x1ac   :  { %v1024_v34 = vpop.f32.mrf.mxu0 }
 0x1ad   :  { %v1217_v17 = vpop.f32.mrf.mxu1  ;;  %v1071_v27 = vadd.f32 %v1070_v61, %v1024_v34 }
 0x1b2   :  { %v1074_v5 = vpop.f32.mrf.mxu3 }
 0x1b5   :  { %v1183_v11 = vpop.f32.mrf.mxu0  ;;  %v1221_v39 = vpop.f32.mrf.mxu1 }
 0x1ba   :  { %v1032_v49 = vpop.f32.mrf.mxu2  ;;  %v1078_v29 = vpop.f32.mrf.mxu3 }
 0x1bb   :  { %v1075_v28 = vadd.f32 %v1074_v5, %v1032_v49 }
 0x1bd   :  { %v1187_v51 = vpop.f32.mrf.mxu0  ;;  %v1225_v36 = vpop.f32.mrf.mxu1 }
 0x1c2   :  { %v1040_v6 = vpop.f32.mrf.mxu2  ;;  %v1141_v10 = vpop.f32.mrf.mxu3 }
 0x1c3   :  { %v1079_v13 = vadd.f32 %v1078_v29, %v1040_v6 }
 0x1c5   :  { %v1191_v32 = vpop.f32.mrf.mxu0  ;;  %v1229_v23 = vpop.f32.mrf.mxu1 }
 0x1ca   :  { %v1102_v7 = vpop.f32.mrf.mxu2  ;;  %v1147_v22 = vpop.f32.mrf.mxu3 }
 0x1cb   :  { %v1103_v48 = vadd.f32 %v1102_v7, %v1067_v41 }
 0x1cd   :  { %v1142_v21 = vadd.f32 %v1141_v10, %v1103_v48  ;;  %v1195_v59 = vpop.f32.mrf.mxu0 }
 0x1cf   :  { %v1184_v20 = vadd.f32 %v1183_v11, %v1142_v21 }
 0x1d1   :  { %v1218_v35 = vadd.f32 %v1217_v17, %v1184_v20 }
 0x1d2   :  { %v1107_v54 = vpop.f32.mrf.mxu2  ;;  %v1153_v12 = vpop.f32.mrf.mxu3 }
 0x1d3   :  { %v1232_v46 = vmul.f32 %v1279_v58, %v1218_v35  ;;  %v1108_v0 = vadd.f32 %v1107_v54, %v1071_v27 }
 0x1d5   :  { %v1239_v62 = vmul.f32 %v1270_v40, %v1232_v46  ;;  %v1148_v14 = vadd.f32 %v1147_v22, %v1108_v0 }
 0x1d7   :  { %1243 = vst [vmem:[#allocation2] sm:$0xff] %v1239_v62  ;;  %v1188_v44 = vadd.f32 %v1187_v51, %v1148_v14 }
 0x1d9   :  { %v1222_v57 = vadd.f32 %v1221_v39, %v1188_v44 }
 0x1da   :  { %v1112_v60 = vpop.f32.mrf.mxu2  ;;  %v1159_v43 = vpop.f32.mrf.mxu3 }
 0x1db   :  { %v1233_v47 = vmul.f32 %v1280_v50, %v1222_v57  ;;  %v1113_v31 = vadd.f32 %v1112_v60, %v1075_v28 }
 0x1dd   :  { %v1240_v8 = vmul.f32 %v1270_v40, %v1233_v47  ;;  %v1154_v63 = vadd.f32 %v1153_v12, %v1113_v31 }
 0x1df   :  { %1244 = vst [vmem:[#allocation2 + $0x8] sm:$0xff] %v1240_v8  ;;  %v1192_v42 = vadd.f32 %v1191_v32, %v1154_v63 }
 0x1e1   :  { %v1226_v52 = vadd.f32 %v1225_v36, %v1192_v42 }
 0x1e2   :  { %v1117_v19 = vpop.f32.mrf.mxu2 }
 0x1e3   :  { %v1234_v30 = vmul.f32 %v1226_v52, %v1643_v1  ;;  %v1118_v45 = vadd.f32 %v1117_v19, %v1079_v13 }
 0x1e5   :  { %v1241_v15 = vmul.f32 %v1270_v40, %v1234_v30  ;;  %v1160_v16 = vadd.f32 %v1159_v43, %v1118_v45 }
 0x1e7   :  { %1245 = vst [vmem:[#allocation2 + $0x10] sm:$0xff] %v1241_v15  ;;  %v1196_v53 = vadd.f32 %v1195_v59, %v1160_v16 }
 0x1e9   :  { %v1230_v37 = vadd.f32 %v1229_v23, %v1196_v53 }
 0x1eb   :  { %v1235_v56 = vmul.f32 %v1230_v37, %v1685_v18 }
 0x1ed   :  { %v1242_v1 = vmul.f32 %v1270_v40, %v1235_v56 }
 0x1ef   :  { %1246 = vst [vmem:[#allocation2 + $0x18] sm:$0xff] %v1242_v1 }
 0x1f0   :  { %1259 = dma.vmem_to_hbm [thread:$0]  %s1252_s1, 512, %s1254_s11, [#allocation3], %s1308_s12, %s1308_s12, %s1309_s13  }
 0x1f1   :  { %1305 = dma.done.wait [#allocation3], 512  }
 0x1f2   :  { %1306 = vsyncadd [#allocation3], 4294966784 }
 0x1f3   :  { %1264 = vsyncpa [#allocation3], 1 }

</bundles_post_ra>
